<compile_context>
chip_gen: v6e
topology: v6e:2x2x1
jax: 0.10.0
libtpu: 0.0.40
codegen_flags: <defaults>
</compile_context>

<pallas_src>
import functools

import jax
import jax.numpy as jnp
from jax import lax
from jax.experimental import pallas as pl
from jax.experimental.pallas import tpu as pltpu


def _edge_network_kernel(x_ref, ri_ref, ro_ref,
                         w1a_ref, w1b_ref, b1_ref, w2_ref, b2_ref,
                         out_ref, *, bt):
    """One (batch-block, edge-tile) grid step.

    Shapes inside the kernel:
      x_ref  : (BT, N, D)        f32
      ri_ref : (BT, N, E_TILE)   bf16 (0/1, exact)
      ro_ref : (BT, N, E_TILE)   bf16 (0/1, exact)
      w1a/w1b: (D, H)            f32   (W1 pre-split: no concat needed)
      b1_ref : (H, 1)            f32
      w2_ref : (H, 1)            f32
      b2_ref : (1, 1)            f32
      out_ref: (BT, E_TILE)      f32
    """
    w1a = w1a_ref[...]                     # (D, H)
    w1b = w1b_ref[...]                     # (D, H)
    b1c = b1_ref[...]                      # (H, 1) -> broadcasts over edges
    w2c = w2_ref[...]                      # (H, 1)
    b2m = b2_ref[...]                      # (1, 1)

    dn_t = (((0,), (0,)), ((), ()))        # contract over the node axis

    for b in range(bt):                    # small static unroll over the batch block
        x = x_ref[b]                                   # (N, D) f32
        ro = ro_ref[b].astype(jnp.float32)             # (N, ET); 0/1 so cast is exact
        ri = ri_ref[b].astype(jnp.float32)             # (N, ET)

        # Tiny projections through the two halves of W1 (replaces concat + big W1).
        p_o = jnp.dot(x, w1a, preferred_element_type=jnp.float32)   # (N, H)
        p_i = jnp.dot(x, w1b, preferred_element_type=jnp.float32)   # (N, H)

        # Big matmuls: edges stay on lanes, incidence consumed in natural layout.
        acc = lax.dot_general(p_o, ro, dn_t,
                              preferred_element_type=jnp.float32)   # (H, ET)
        acc = acc + lax.dot_general(p_i, ri, dn_t,
                                    preferred_element_type=jnp.float32)

        h = jnp.tanh(acc + b1c)                                      # (H, ET)
        # Final linear = per-lane multiply + sublane reduce (VPU/XLU, E lane-dense).
        logits = jnp.sum(h * w2c, axis=0, keepdims=True) + b2m       # (1, ET)
        out_ref[pl.ds(b, 1), :] = jax.nn.sigmoid(logits)             # lane-dense store


def edge_network(X, Ri, Ro, w1, b1, w2, b2, *, e_tile=512):
    """Pallas forward matching EdgeNetwork.forward(X, Ri, Ro)."""
    batch, n_nodes, input_dim = X.shape
    n_edges = Ri.shape[2]
    hidden_dim = w1.shape[1]

    # --- batch blocking (amortize per-grid-step overhead) -------------------
    if batch <= 8:
        bt = batch
        batch_pad = batch
    else:
        bt = 8
        batch_pad = ((batch + 7) // 8) * 8

    # --- edge tiling: lane-dense, multiple of 128 ----------------------------
    lane = 128
    e_rounded = ((n_edges + lane - 1) // lane) * lane
    et = max(lane, (min(e_rounded, e_tile) // lane) * lane)
    e_pad = ((n_edges + et - 1) // et) * et

    # --- pad + cast inputs ----------------------------------------------------
    Xp = X.astype(jnp.float32)
    Rip = Ri
    Rop = Ro
    if batch_pad != batch:
        Xp = jnp.pad(Xp, ((0, batch_pad - batch), (0, 0), (0, 0)))
        Rip = jnp.pad(Rip, ((0, batch_pad - batch), (0, 0), (0, 0)))
        Rop = jnp.pad(Rop, ((0, batch_pad - batch), (0, 0), (0, 0)))
    if e_pad != n_edges:
        Rip = jnp.pad(Rip, ((0, 0), (0, 0), (0, e_pad - n_edges)))
        Rop = jnp.pad(Rop, ((0, 0), (0, 0), (0, e_pad - n_edges)))
    # 0/1 incidence matrices are exact in bf16 -> half the dominant HBM bytes.
    Rip = Rip.astype(jnp.bfloat16)
    Rop = Rop.astype(jnp.bfloat16)

    # Pre-split W1 so the kernel never concatenates (bo@W1a + bi@W1b == [bo,bi]@W1).
    w1a = w1[:input_dim].astype(jnp.float32)     # pairs with Ro-aggregated features
    w1b = w1[input_dim:].astype(jnp.float32)     # pairs with Ri-aggregated features
    b1c = b1.reshape(hidden_dim, 1).astype(jnp.float32)
    w2c = w2.reshape(hidden_dim, 1).astype(jnp.float32)
    b2c = b2.reshape(1, 1).astype(jnp.float32)

    grid = (batch_pad // bt, e_pad // et)

    # Advisory cost estimate for the XLA scheduler.
    flops = int(batch_pad * (4 * n_nodes * input_dim * hidden_dim
                             + 4 * n_nodes * e_pad * hidden_dim
                             + 3 * e_pad * hidden_dim + 2 * e_pad))
    transcendentals = int(batch_pad * e_pad * (hidden_dim + 1))
    bytes_accessed = int(Xp.size * 4 + Rip.size * 2 + Rop.size * 2
                         + batch_pad * e_pad * 4
                         + (w1a.size + w1b.size + b1c.size + w2c.size + b2c.size) * 4)

    # Per-step VMEM footprint (the pipeline double-buffers each block).
    step_bytes = (bt * n_nodes * input_dim * 4
                  + 2 * bt * n_nodes * et * 2
                  + bt * et * 4
                  + (w1a.size + w1b.size + b1c.size + w2c.size + b2c.size) * 4)
    vmem_limit = int(min(max(3 * step_bytes + (2 << 20), 16 << 20), 40 << 20))

    kernel = functools.partial(_edge_network_kernel, bt=bt)

    out_pad = pl.pallas_call(
        kernel,
        out_shape=jax.ShapeDtypeStruct((batch_pad, e_pad), jnp.float32),
        grid_spec=pltpu.PrefetchScalarGridSpec(
            num_scalar_prefetch=0,
            grid=grid,
            in_specs=[
                pl.BlockSpec((bt, n_nodes, input_dim), lambda b, e: (b, 0, 0)),
                pl.BlockSpec((bt, n_nodes, et),        lambda b, e: (b, 0, e)),
                pl.BlockSpec((bt, n_nodes, et),        lambda b, e: (b, 0, e)),
                pl.BlockSpec((input_dim, hidden_dim),  lambda b, e: (0, 0)),
                pl.BlockSpec((input_dim, hidden_dim),  lambda b, e: (0, 0)),
                pl.BlockSpec((hidden_dim, 1),          lambda b, e: (0, 0)),
                pl.BlockSpec((hidden_dim, 1),          lambda b, e: (0, 0)),
                pl.BlockSpec((1, 1),                   lambda b, e: (0, 0)),
            ],
            out_specs=pl.BlockSpec((bt, et), lambda b, e: (b, e)),
        ),
        compiler_params=pltpu.CompilerParams(
            dimension_semantics=("parallel", "parallel"),
            vmem_limit_bytes=vmem_limit,
        ),
        cost_estimate=pl.CostEstimate(
            flops=flops,
            transcendentals=transcendentals,
            bytes_accessed=bytes_accessed,
        ),
    )(Xp, Rip, Rop, w1a, w1b, b1c, w2c, b2c)

    return out_pad[:batch, :n_edges]


def edge_network_ref(X, Ri, Ro, w1, b1, w2, b2):
    """Plain-JAX reference mirroring the PyTorch forward."""
    bo = jnp.einsum('bne,bnd->bed', Ro, X)
    bi = jnp.einsum('bne,bnd->bed', Ri, X)
    B = jnp.concatenate([bo, bi], axis=2)
    h = jnp.tanh(B @ w1 + b1)
    out = jax.nn.sigmoid(h @ w2 + b2)
    return out[..., 0]


if __name__ == "__main__":
    # Small, module-consistent shapes.
    batch, n_nodes, n_edges = 2, 16, 32
    input_dim, hidden_dim = 4, 8

    key = jax.random.PRNGKey(0)
    kx, kri, kro, kw1, kb1, kw2, kb2 = jax.random.split(key, 7)

    X = jax.random.normal(kx, (batch, n_nodes, input_dim), dtype=jnp.float32)
    # Incidence-like matrices (0/1 entries).
    Ri = (jax.random.uniform(kri, (batch, n_nodes, n_edges)) < 0.1).astype(jnp.float32)
    Ro = (jax.random.uniform(kro, (batch, n_nodes, n_edges)) < 0.1).astype(jnp.float32)

    # Deterministic parameter init (PyTorch Linear-style uniform bounds).
    lim1 = 1.0 / (2 * input_dim) ** 0.5
    lim2 = 1.0 / hidden_dim ** 0.5
    w1 = jax.random.uniform(kw1, (2 * input_dim, hidden_dim),
                            minval=-lim1, maxval=lim1, dtype=jnp.float32)
    b1 = jax.random.uniform(kb1, (hidden_dim,),
                            minval=-lim1, maxval=lim1, dtype=jnp.float32)
    w2 = jax.random.uniform(kw2, (hidden_dim, 1),
                            minval=-lim2, maxval=lim2, dtype=jnp.float32)
    b2 = jax.random.uniform(kb2, (1,),
                            minval=-lim2, maxval=lim2, dtype=jnp.float32)

    out = edge_network(X, Ri, Ro, w1, b1, w2, b2)
    out = jax.block_until_ready(out)

    ref = edge_network_ref(X, Ri, Ro, w1, b1, w2, b2)
    assert out.shape == (batch, n_edges)
    # Tolerance covers TPU default-precision matmul passes; the kernel uses an
    # algebraically identical but reordered contraction vs. the reference.
    assert jnp.allclose(out, ref, atol=2e-3, rtol=2e-3), \
        float(jnp.max(jnp.abs(out - ref)))

    print("KERNEL_OK")
</pallas_src>

<mosaic_0001>
module attributes {stable_mosaic.version = 11 : i64} {
  func.func @_edge_network_kernel(%arg0: i32, %arg1: i32, %arg2: memref<2x16x4xf32, #tpu.memory_space<vmem>>, %arg3: memref<2x16x128xbf16, #tpu.memory_space<vmem>>, %arg4: memref<2x16x128xbf16, #tpu.memory_space<vmem>>, %arg5: memref<4x8xf32, #tpu.memory_space<vmem>>, %arg6: memref<4x8xf32, #tpu.memory_space<vmem>>, %arg7: memref<8x1xf32, #tpu.memory_space<vmem>>, %arg8: memref<8x1xf32, #tpu.memory_space<vmem>>, %arg9: memref<1x1xf32, #tpu.memory_space<vmem>>, %arg10: memref<2x128xf32, #tpu.memory_space<vmem>>) attributes {dimension_semantics = [#tpu.dimension_semantics<parallel>, #tpu.dimension_semantics<parallel>], iteration_bounds = array<i64: 1, 1>, scalar_prefetch = 0 : i64, scratch_operands = 0 : i64, tpu.core_type = #tpu.core_type<tc>, window_params = [{transform_indices = @transform_0, window_bounds = array<i64: 2, 16, 4>}, {transform_indices = @transform_1, window_bounds = array<i64: 2, 16, 128>}, {transform_indices = @transform_2, window_bounds = array<i64: 2, 16, 128>}, {pipeline_mode = #tpu.pipeline_mode<synchronous>, transform_indices = @transform_3, window_bounds = array<i64: 4, 8>}, {pipeline_mode = #tpu.pipeline_mode<synchronous>, transform_indices = @transform_4, window_bounds = array<i64: 4, 8>}, {pipeline_mode = #tpu.pipeline_mode<synchronous>, transform_indices = @transform_5, window_bounds = array<i64: 8, 1>}, {pipeline_mode = #tpu.pipeline_mode<synchronous>, transform_indices = @transform_6, window_bounds = array<i64: 8, 1>}, {pipeline_mode = #tpu.pipeline_mode<synchronous>, transform_indices = @transform_7, window_bounds = array<i64: 1, 1>}, {transform_indices = @transform_8, window_bounds = array<i64: 2, 128>}]} {
    %c0 = arith.constant 0 : index
    %c0_0 = arith.constant 0 : index
    %0 = vector.load %arg5[%c0, %c0_0] : memref<4x8xf32, #tpu.memory_space<vmem>>, vector<4x8xf32>
    %c0_1 = arith.constant 0 : index
    %c0_2 = arith.constant 0 : index
    %1 = vector.load %arg6[%c0_1, %c0_2] : memref<4x8xf32, #tpu.memory_space<vmem>>, vector<4x8xf32>
    %c0_3 = arith.constant 0 : index
    %c0_4 = arith.constant 0 : index
    %2 = vector.load %arg7[%c0_3, %c0_4] : memref<8x1xf32, #tpu.memory_space<vmem>>, vector<8x1xf32>
    %c0_5 = arith.constant 0 : index
    %c0_6 = arith.constant 0 : index
    %3 = vector.load %arg8[%c0_5, %c0_6] : memref<8x1xf32, #tpu.memory_space<vmem>>, vector<8x1xf32>
    %c0_7 = arith.constant 0 : index
    %c0_8 = arith.constant 0 : index
    %4 = vector.load %arg9[%c0_7, %c0_8] : memref<1x1xf32, #tpu.memory_space<vmem>>, vector<1x1xf32>
    %c0_9 = arith.constant 0 : index
    %c0_10 = arith.constant 0 : index
    %c0_11 = arith.constant 0 : index
    %5 = vector.load %arg2[%c0_9, %c0_10, %c0_11] : memref<2x16x4xf32, #tpu.memory_space<vmem>>, vector<1x16x4xf32>
    %6 = vector.shape_cast %5 : vector<1x16x4xf32> to vector<16x4xf32>
    %c0_12 = arith.constant 0 : index
    %c0_13 = arith.constant 0 : index
    %c0_14 = arith.constant 0 : index
    %7 = vector.load %arg4[%c0_12, %c0_13, %c0_14] : memref<2x16x128xbf16, #tpu.memory_space<vmem>>, vector<1x16x128xbf16>
    %8 = vector.shape_cast %7 : vector<1x16x128xbf16> to vector<16x128xbf16>
    %9 = arith.extf %8 : vector<16x128xbf16> to vector<16x128xf32>
    %c0_15 = arith.constant 0 : index
    %c0_16 = arith.constant 0 : index
    %c0_17 = arith.constant 0 : index
    %10 = vector.load %arg3[%c0_15, %c0_16, %c0_17] : memref<2x16x128xbf16, #tpu.memory_space<vmem>>, vector<1x16x128xbf16>
    %11 = vector.shape_cast %10 : vector<1x16x128xbf16> to vector<16x128xbf16>
    %12 = arith.extf %11 : vector<16x128xbf16> to vector<16x128xf32>
    %cst = arith.constant dense<0.000000e+00> : vector<16x8xf32>
    %13 = tpu.matmul %6, %0, %cst {dimension_numbers = #tpu.dot_dimension_numbers<[1], [0], [0], [1], [0, 0, 1, 1], [], []>} : vector<16x4xf32>, vector<4x8xf32>, vector<16x8xf32> -> vector<16x8xf32>
    %cst_18 = arith.constant dense<0.000000e+00> : vector<16x8xf32>
    %14 = tpu.matmul %6, %1, %cst_18 {dimension_numbers = #tpu.dot_dimension_numbers<[1], [0], [0], [1], [0, 0, 1, 1], [], []>} : vector<16x4xf32>, vector<4x8xf32>, vector<16x8xf32> -> vector<16x8xf32>
    %cst_19 = arith.constant dense<0.000000e+00> : vector<8x128xf32>
    %15 = tpu.matmul %13, %9, %cst_19 {dimension_numbers = #tpu.dot_dimension_numbers<[0], [0], [1], [1], [0, 1, 1, 1], [], []>} : vector<16x8xf32>, vector<16x128xf32>, vector<8x128xf32> -> vector<8x128xf32>
    %cst_20 = arith.constant dense<0.000000e+00> : vector<8x128xf32>
    %16 = tpu.matmul %14, %12, %cst_20 {dimension_numbers = #tpu.dot_dimension_numbers<[0], [0], [1], [1], [0, 1, 1, 1], [], []>} : vector<16x8xf32>, vector<16x128xf32>, vector<8x128xf32> -> vector<8x128xf32>
    %17 = arith.addf %15, %16 : vector<8x128xf32>
    %18 = vector.broadcast %2 : vector<8x1xf32> to vector<8x128xf32>
    %19 = arith.addf %17, %18 : vector<8x128xf32>
    %20 = math.tanh %19 : vector<8x128xf32>
    %21 = vector.broadcast %3 : vector<8x1xf32> to vector<8x128xf32>
    %22 = arith.mulf %20, %21 : vector<8x128xf32>
    %cst_21 = arith.constant dense<0.000000e+00> : vector<128xf32>
    %23 = vector.multi_reduction <add>, %22, %cst_21 [0] : vector<8x128xf32> to vector<128xf32>
    %24 = vector.shape_cast %23 : vector<128xf32> to vector<1x128xf32>
    %25 = vector.broadcast %4 : vector<1x1xf32> to vector<1x128xf32>
    %26 = arith.addf %24, %25 : vector<1x128xf32>
    %27 = arith.negf %26 : vector<1x128xf32>
    %28 = math.exp %27 : vector<1x128xf32>
    %cst_22 = arith.constant 1.000000e+00 : f32
    %29 = vector.broadcast %cst_22 : f32 to vector<1x128xf32>
    %30 = arith.addf %29, %28 : vector<1x128xf32>
    %31 = arith.divf %29, %30 : vector<1x128xf32>
    %c0_23 = arith.constant 0 : index
    %c0_24 = arith.constant 0 : index
    %32 = vector.load %arg10[%c0_23, %c0_24] : memref<2x128xf32, #tpu.memory_space<vmem>>, vector<1x128xf32>
    tpu.vector_store %arg10[%c0_23, %c0_24], %31 {strides = array<i32>} : memref<2x128xf32, #tpu.memory_space<vmem>>, vector<1x128xf32>,
    %c1 = arith.constant 1 : index
    %c0_25 = arith.constant 0 : index
    %c0_26 = arith.constant 0 : index
    %33 = vector.load %arg2[%c1, %c0_25, %c0_26] : memref<2x16x4xf32, #tpu.memory_space<vmem>>, vector<1x16x4xf32>
    %34 = vector.shape_cast %33 : vector<1x16x4xf32> to vector<16x4xf32>
    %c1_27 = arith.constant 1 : index
    %c0_28 = arith.constant 0 : index
    %c0_29 = arith.constant 0 : index
    %35 = vector.load %arg4[%c1_27, %c0_28, %c0_29] : memref<2x16x128xbf16, #tpu.memory_space<vmem>>, vector<1x16x128xbf16>
    %36 = vector.shape_cast %35 : vector<1x16x128xbf16> to vector<16x128xbf16>
    %37 = arith.extf %36 : vector<16x128xbf16> to vector<16x128xf32>
    %c1_30 = arith.constant 1 : index
    %c0_31 = arith.constant 0 : index
    %c0_32 = arith.constant 0 : index
    %38 = vector.load %arg3[%c1_30, %c0_31, %c0_32] : memref<2x16x128xbf16, #tpu.memory_space<vmem>>, vector<1x16x128xbf16>
    %39 = vector.shape_cast %38 : vector<1x16x128xbf16> to vector<16x128xbf16>
    %40 = arith.extf %39 : vector<16x128xbf16> to vector<16x128xf32>
    %cst_33 = arith.constant dense<0.000000e+00> : vector<16x8xf32>
    %41 = tpu.matmul %34, %0, %cst_33 {dimension_numbers = #tpu.dot_dimension_numbers<[1], [0], [0], [1], [0, 0, 1, 1], [], []>} : vector<16x4xf32>, vector<4x8xf32>, vector<16x8xf32> -> vector<16x8xf32>
    %cst_34 = arith.constant dense<0.000000e+00> : vector<16x8xf32>
    %42 = tpu.matmul %34, %1, %cst_34 {dimension_numbers = #tpu.dot_dimension_numbers<[1], [0], [0], [1], [0, 0, 1, 1], [], []>} : vector<16x4xf32>, vector<4x8xf32>, vector<16x8xf32> -> vector<16x8xf32>
    %cst_35 = arith.constant dense<0.000000e+00> : vector<8x128xf32>
    %43 = tpu.matmul %41, %37, %cst_35 {dimension_numbers = #tpu.dot_dimension_numbers<[0], [0], [1], [1], [0, 1, 1, 1], [], []>} : vector<16x8xf32>, vector<16x128xf32>, vector<8x128xf32> -> vector<8x128xf32>
    %cst_36 = arith.constant dense<0.000000e+00> : vector<8x128xf32>
    %44 = tpu.matmul %42, %40, %cst_36 {dimension_numbers = #tpu.dot_dimension_numbers<[0], [0], [1], [1], [0, 1, 1, 1], [], []>} : vector<16x8xf32>, vector<16x128xf32>, vector<8x128xf32> -> vector<8x128xf32>
    %45 = arith.addf %43, %44 : vector<8x128xf32>
    %46 = vector.broadcast %2 : vector<8x1xf32> to vector<8x128xf32>
    %47 = arith.addf %45, %46 : vector<8x128xf32>
    %48 = math.tanh %47 : vector<8x128xf32>
    %49 = vector.broadcast %3 : vector<8x1xf32> to vector<8x128xf32>
    %50 = arith.mulf %48, %49 : vector<8x128xf32>
    %cst_37 = arith.constant dense<0.000000e+00> : vector<128xf32>
    %51 = vector.multi_reduction <add>, %50, %cst_37 [0] : vector<8x128xf32> to vector<128xf32>
    %52 = vector.shape_cast %51 : vector<128xf32> to vector<1x128xf32>
    %53 = vector.broadcast %4 : vector<1x1xf32> to vector<1x128xf32>
    %54 = arith.addf %52, %53 : vector<1x128xf32>
    %55 = arith.negf %54 : vector<1x128xf32>
    %56 = math.exp %55 : vector<1x128xf32>
    %cst_38 = arith.constant 1.000000e+00 : f32
    %57 = vector.broadcast %cst_38 : f32 to vector<1x128xf32>
    %58 = arith.addf %57, %56 : vector<1x128xf32>
    %59 = arith.divf %57, %58 : vector<1x128xf32>
    %c1_39 = arith.constant 1 : index
    %c0_40 = arith.constant 0 : index
    %60 = vector.load %arg10[%c1_39, %c0_40] : memref<2x128xf32, #tpu.memory_space<vmem>>, vector<1x128xf32>
    tpu.vector_store %arg10[%c1_39, %c0_40], %59 {strides = array<i32>} : memref<2x128xf32, #tpu.memory_space<vmem>>, vector<1x128xf32>,
    return
  }
  func.func @transform_0(%arg0: i32, %arg1: i32) -> (i32, i32, i32) {
    %c0_i32 = arith.constant 0 : i32
    %c0_i32_0 = arith.constant 0 : i32
    %c0_i32_1 = arith.constant 0 : i32
    return %arg0, %c0_i32, %c0_i32_0 : i32, i32, i32
  }
  func.func @transform_1(%arg0: i32, %arg1: i32) -> (i32, i32, i32) {
    %c0_i32 = arith.constant 0 : i32
    %c0_i32_0 = arith.constant 0 : i32
    return %arg0, %c0_i32, %arg1 : i32, i32, i32
  }
  func.func @transform_2(%arg0: i32, %arg1: i32) -> (i32, i32, i32) {
    %c0_i32 = arith.constant 0 : i32
    %c0_i32_0 = arith.constant 0 : i32
    return %arg0, %c0_i32, %arg1 : i32, i32, i32
  }
  func.func @transform_3(%arg0: i32, %arg1: i32) -> (i32, i32) {
    %c0_i32 = arith.constant 0 : i32
    %c0_i32_0 = arith.constant 0 : i32
    %c0_i32_1 = arith.constant 0 : i32
    return %c0_i32, %c0_i32_0 : i32, i32
  }
  func.func @transform_4(%arg0: i32, %arg1: i32) -> (i32, i32) {
    %c0_i32 = arith.constant 0 : i32
    %c0_i32_0 = arith.constant 0 : i32
    %c0_i32_1 = arith.constant 0 : i32
    return %c0_i32, %c0_i32_0 : i32, i32
  }
  func.func @transform_5(%arg0: i32, %arg1: i32) -> (i32, i32) {
    %c0_i32 = arith.constant 0 : i32
    %c0_i32_0 = arith.constant 0 : i32
    %c0_i32_1 = arith.constant 0 : i32
    return %c0_i32, %c0_i32_0 : i32, i32
  }
  func.func @transform_6(%arg0: i32, %arg1: i32) -> (i32, i32) {
    %c0_i32 = arith.constant 0 : i32
    %c0_i32_0 = arith.constant 0 : i32
    %c0_i32_1 = arith.constant 0 : i32
    return %c0_i32, %c0_i32_0 : i32, i32
  }
  func.func @transform_7(%arg0: i32, %arg1: i32) -> (i32, i32) {
    %c0_i32 = arith.constant 0 : i32
    %c0_i32_0 = arith.constant 0 : i32
    %c0_i32_1 = arith.constant 0 : i32
    return %c0_i32, %c0_i32_0 : i32, i32
  }
  func.func @transform_8(%arg0: i32, %arg1: i32) -> (i32, i32) {
    %c0_i32 = arith.constant 0 : i32
    return %arg0, %arg1 : i32, i32
  }
}

</mosaic_0001>

<bundles_post_ra>
// kernel: tpu_custom_call.1
= control target key start
LH: loop header
LB: loop body
LE: loop exit
PB: predicated region body
PF: predicated region fallthrough
CT: control target
= control target key end

     0   :  { %s1137_s0 = inlined_call_operand.vmem [shape: f32[2,16,4], index: 0, kind: input, shape index: {}]   ;;  %s1138_s1 = inlined_call_operand.vmem [shape: bf16[2,16,128], index: 1, kind: input, shape index: {}]   ;;  %s1139_s2 = inlined_call_operand.vmem [shape: bf16[2,16,128], index: 2, kind: input, shape index: {}]   ;;  %s1140_s3 = inlined_call_operand.vmem [shape: f32[4,8], index: 3, kind: input, shape index: {}]   ;;  %s1141_s4 = inlined_call_operand.vmem [shape: f32[4,8], index: 4, kind: input, shape index: {}]   ;;  %s1142_s5 = inlined_call_operand.vmem [shape: f32[8,1], index: 5, kind: input, shape index: {}]   ;;  %s1143_s6 = inlined_call_operand.vmem [shape: f32[8,1], index: 6, kind: input, shape index: {}]   ;;  %s1144_s7 = inlined_call_operand.<no memory space> [shape: f32[1,1], index: 7, kind: input, shape index: {}]   ;;  %s1145_s8 = inlined_call_operand.hbm [shape: f32[2,128], index: 8, kind: output, shape index: {}]  }
   0x1   :  { %v13_v0 = vstv %s1144_s7 }
   0x2   :  { %14 = vst [vmem:[#allocation2] sm:$0x1] %v13_v0 }
   0x3   :  { %v32_v1 = vld [vmem:[%s1140_s3] sm:$0xf]  ;;  %vm54_vm0 = vcmask 1043456   ;;  %vm47_vm1 = vcmask 31744   ;;  %v38_v4 = vld [vmem:[%s1137_s0 + $0x8] sm:$0xff] }
   0x4   :  { %v33_v2 = vld [vmem:[%s1141_s4] sm:$0xf]  ;;  %934 = vmatprep.subr.msk.mxu0 %vm54_vm0, %v32_v1 }
   0x5   :  { %v37_v3 = vld [vmem:[%s1137_s0] sm:$0xff]  ;;  %939 = vmatprep.subr.msk.mxu1 %vm54_vm0, %v33_v2 }
   0x6   :  { %15 = vsyncpa [#allocation4], 0  ;;  %935 = vmatpush3.msk.msra.mxu0 %vm54_vm0, %v32_v1  ;;  %936 = vmatprep.mubr.msk.f32.mxu0 %vm47_vm1, %v37_v3  ;;  %v897_v5 = vld [vmem:[%s1138_s1] sm:$0xff]   ;;  %v1022_v7 = vmov 0.0   ;;  %vm1023_vm2 = vmmov 0   ;;  %vm243_vm3 = vcmask 130048   ;;  %v446_v44 = vlaneseq }
   0x7   :  { %940 = vmatpush3.msk.msra.mxu1 %vm54_vm0, %v33_v2  ;;  %941 = vmatprep.mubr.msk.f32.mxu1 %vm47_vm1, %v37_v3  ;;  %v893_v6 = vld [vmem:[%s1139_s2] sm:$0xff]   ;;  %v899_v8 = vunpack.c.h.bf16 %v897_v5  ;;  %v898_v10 = vunpack.c.l.bf16 %v897_v5  ;;  %v877_v18 = vld [vmem:[%s1137_s0 + $0x10] sm:$0xff]  ;;  %v878_v19 = vld [vmem:[%s1137_s0 + $0x18] sm:$0xff]  ;;  %v1024_v36 = vmov 0  }
   0x8   :  { %937 = vmatmul.mubr.msk.f32.vlgmr.msra.gmra.mxu0 %vm47_vm1, %v38_v4  ;;  %942 = vmatmul.mubr.msk.f32.vlgmr.msra.gmra.mxu1 %vm47_vm1, %v38_v4  ;;  %v895_v9 = vunpack.c.h.bf16 %v893_v6  ;;  %v894_v11 = vunpack.c.l.bf16 %v893_v6  ;;  %v909_v20 = vld [vmem:[%s1138_s1 + $0x8] sm:$0xff]   ;;  %v35_v35 = vld [vmem:[%s1143_s6] sm:$0xff]  ;;  %v447_v48 = vshrl.u32 %v446_v44, 7 }
   0x9   :  { %944 = vmatprep.subr.mxu0 %v1022_v7  ;;  %951 = vmatprep.subr.mxu1 %v1022_v7  ;;  %v907_v21 = vunpack.c.h.bf16 %v909_v20  ;;  %v908_v22 = vld [vmem:[%s1139_s2 + $0x8] sm:$0xff]   ;;  %v906_v23 = vunpack.c.l.bf16 %v909_v20  ;;  %v36_v37 = vld [vmem:[#allocation2] sm:$0x1] }
   0xa   :  { %955 = vmatprep.mubr.msk.f32.mxu1 %vm1023_vm2, %v1022_v7  ;;  %948 = vmatprep.mubr.msk.f32.mxu0 %vm1023_vm2, %v1022_v7  ;;  %v903_v24 = vunpack.c.h.bf16 %v908_v22  ;;  %v902_v25 = vunpack.c.l.bf16 %v908_v22  ;;  %v34_v38 = vld [vmem:[%s1142_s5] sm:$0xff]  ;;  %v448_v51 = vsub.s32 0, %v447_v48  ;;  %s1025_s5 = smov [#allocation3]  }
   0xb   :  { %945 = vmatpush3.msra.mxu0 %v899_v8  ;;  %952 = vmatpush3.msra.mxu1 %v895_v9  ;;  %s860_s6 = sshll.u32 %s1025_s5, 4  ;;  %s861_s6 = int_to_ptr.vmem [resolvable:$true] %s860_s6 }
   0xc   :  { %946 = vmatprep.subr.mxu0 %v1022_v7  ;;  %953 = vmatprep.subr.mxu1 %v1022_v7  ;;  %s1000_s25 = scalar_lea.vmem %s861_s6, 32  ;;  %p1005_p1 = scmp.lt.s32.totalorder %s861_s6, %s861_s6 }
   0xd   :  { %947 = vmatpush3.msra.mxu0 %v898_v10  ;;  %954 = vmatpush3.msra.mxu1 %v894_v11  ;;  %p1001_p0 = scmp.ne.s32.totalorder %s861_s6, %s1000_s25  ;;  %p1006_p2 = scmp.lt.s32.totalorder %s1000_s25, %s1000_s25 }
   0xe   :  { %963 = vmatprep.subr.msk.mxu1 %vm54_vm0, %v33_v2  ;;  %958 = vmatprep.subr.msk.mxu0 %vm54_vm0, %v32_v1 }
   0xf   :  { %p1007_p3 = por %p1006_p2, %p1005_p1 }
  0x11   :  { %p1008_p4 = pnand %p1007_p3, %p1001_p0 }
  0xc8   :  { %v938_v12 = vpop.f32.mrf.mxu0  ;;  %v943_v13 = vpop.f32.mrf.mxu1 }
  0xca   :  { %v124_v14 = vpop.f32.mrf.mxu0  ;;  %v202_v15 = vpop.f32.mrf.mxu1 }
  0xcb   :  { %211 = vxpose.xlu0.b32.start [1/2] (short) (narrow) %v202_v15, 8  ;;  %317 = vxpose.xlu1.b32.start [1/2] (short) (narrow) %v124_v14, 8 }
  0xcf   :  { %212 = vxpose.xlu0.b32.end [2/2] (short) (narrow) %v943_v13, 8  ;;  %318 = vxpose.xlu1.b32.end [2/2] (short) (narrow) %v938_v12, 8 }
 0x147   :  { %v227_v16 = vpop.trf.xlu0  ;;  %v333_v17 = vpop.trf.xlu1 }
 0x148   :  { %949 = vmatmul.mubr.msk.f32.vlgmr.msra.gmra.mxu0 %vm243_vm3, %v227_v16  ;;  %956 = vmatmul.mubr.msk.f32.vlgmr.msra.gmra.mxu1 %vm243_vm3, %v333_v17 }
 0x149   :  { %959 = vmatpush3.msk.msra.mxu0 %vm54_vm0, %v32_v1  ;;  %964 = vmatpush3.msk.msra.mxu1 %vm54_vm0, %v33_v2 }
 0x14a   :  { %960 = vmatprep.mubr.msk.f32.mxu0 %vm47_vm1, %v877_v18  ;;  %965 = vmatprep.mubr.msk.f32.mxu1 %vm47_vm1, %v877_v18 }
 0x14b   :  { %968 = vmatprep.subr.mxu0 %v1022_v7  ;;  %975 = vmatprep.subr.mxu1 %v1022_v7 }
 0x14c   :  { %961 = vmatmul.mubr.msk.f32.vlgmr.msra.gmra.mxu0 %vm47_vm1, %v878_v19  ;;  %966 = vmatmul.mubr.msk.f32.vlgmr.msra.gmra.mxu1 %vm47_vm1, %v878_v19 }
 0x14d   :  { %972 = vmatprep.mubr.msk.f32.mxu0 %vm1023_vm2, %v1022_v7  ;;  %979 = vmatprep.mubr.msk.f32.mxu1 %vm1023_vm2, %v1022_v7 }
 0x14e   :  { %969 = vmatpush3.msra.mxu0 %v907_v21  ;;  %976 = vmatpush3.msra.mxu1 %v903_v24 }
 0x14f   :  { %970 = vmatprep.subr.mxu0 %v1022_v7  ;;  %977 = vmatprep.subr.mxu1 %v1022_v7 }
 0x150   :  { %971 = vmatpush3.msra.mxu0 %v906_v23  ;;  %978 = vmatpush3.msra.mxu1 %v902_v25 }
 0x208   :  { %v313_v26 = vpop.f32.mrf.mxu0  ;;  %v418_v27 = vpop.f32.mrf.mxu1 }
 0x209   :  { %v419_v28 = vadd.f32 %v418_v27, %v313_v26 }
 0x20a   :  { %v950_v29 = vpop.f32.mrf.mxu0  ;;  %v957_v30 = vpop.f32.mrf.mxu1 }
 0x20c   :  { %v962_v31 = vpop.f32.mrf.mxu0  ;;  %v967_v32 = vpop.f32.mrf.mxu1 }
 0x20e   :  { %v543_v33 = vpop.f32.mrf.mxu0  ;;  %v618_v34 = vpop.f32.mrf.mxu1 }
 0x20f   :  { %627 = vxpose.xlu0.b32.start [1/2] (short) (narrow) %v618_v34, 8  ;;  %732 = vxpose.xlu1.b32.start [1/2] (short) (narrow) %v543_v33, 8 }
 0x213   :  { %628 = vxpose.xlu0.b32.end [2/2] (short) (narrow) %v967_v32, 8  ;;  %733 = vxpose.xlu1.b32.end [2/2] (short) (narrow) %v962_v31, 8 }
 0x231   :  { %987 = vset.pattern.permute.xlu1 %v1024_v36 }
 0x232   :  { %431 = vperm.xlu1 %987, %v35_v35  }
 0x236   :  { %443 = vperm.xlu1 %987, %v36_v37  }
 0x23c   :  { %986 = vset.pattern.permute.xlu0 %v1024_v36 }
 0x23d   :  { %424 = vperm.xlu0 %986, %v34_v38  }
 0x28b   :  { %v643_v39 = vpop.trf.xlu0  ;;  %v748_v40 = vpop.trf.xlu1 }
 0x28c   :  { %973 = vmatmul.mubr.msk.f32.vlgmr.msra.gmra.mxu0 %vm243_vm3, %v643_v39  ;;  %980 = vmatmul.mubr.msk.f32.vlgmr.msra.gmra.mxu1 %vm243_vm3, %v748_v40 }
 0x2ad   :  { %v432_v43 = vpop.permute.xlu1 %431 }
 0x2b1   :  { %v444_v52 = vpop.permute.xlu1 %443 }
 0x2b2   :  { %v449_v55 = vrot.slane %v444_v52, %v448_v51 }
 0x2b8   :  { %v425_v41 = vpop.permute.xlu0 %424 }
 0x2b9   :  { %v427_v42 = vadd.f32 %v425_v41, %v419_v28 }
 0x2bb   :  { %988 = vtanh.f32 %v427_v42 }
 0x2c8   :  { %v989_v45 = vpop.eup %988 }
 0x2c9   :  { %v434_v46 = vmul.f32 %v989_v45, %v432_v43 }
 0x2cb   :  { %v435_v47 = vrot.slane %v434_v46, 4 }
 0x2cd   :  { %v436_v49 = vadd.f32 %v435_v47, %v434_v46 }
 0x2cf   :  { %v437_v50 = vrot.slane %v436_v49, 2 }
 0x2d1   :  { %v438_v53 = vadd.f32 %v437_v50, %v436_v49 }
 0x2d3   :  { %v439_v54 = vrot.slane %v438_v53, 1 }
 0x2d5   :  { %v440_v56 = vadd.f32 %v439_v54, %v438_v53 }
 0x2d7   :  { %v450_v57 = vadd.f32 %v449_v55, %v440_v56 }
 0x2d9   :  { %v876_v58 = vmul.f32 -1.442695, %v450_v57 }
 0x2db   :  { %990 = vpow2.f32 %v876_v58 }
 0x2e8   :  { %v991_v59 = vpop.eup %990 }
 0x2e9   :  { %v454_v60 = vadd.f32 1.0, %v991_v59 }
 0x2eb   :  { %992 = vrcp.f32 %v454_v60 }
 0x2f8   :  { %v993_v61 = vpop.eup %992 }
 0x2f9   :  { %457 = vst [vmem:[#allocation3] sm:$0x1] %v993_v61 }
 0x34c   :  { %v728_v62 = vpop.f32.mrf.mxu0  ;;  %v833_v63 = vpop.f32.mrf.mxu1 }
 0x34d   :  { %v834_v0 = vadd.f32 %v833_v63, %v728_v62 }
 0x34e   :  { %v974_v1 = vpop.f32.mrf.mxu0  ;;  %v981_v2 = vpop.f32.mrf.mxu1 }
 0x34f   :  { %v837_v3 = vadd.f32 %v834_v0, %v425_v41 }
 0x351   :  { %994 = vtanh.f32 %v837_v3 }
 0x35e   :  { %v995_v4 = vpop.eup %994 }
 0x35f   :  { %v839_v5 = vmul.f32 %v995_v4, %v432_v43 }
 0x361   :  { %v840_v6 = vrot.slane %v839_v5, 4 }
 0x363   :  { %v841_v7 = vadd.f32 %v840_v6, %v839_v5 }
 0x365   :  { %v842_v8 = vrot.slane %v841_v7, 2 }
 0x367   :  { %v843_v9 = vadd.f32 %v842_v8, %v841_v7 }
 0x369   :  { %v844_v10 = vrot.slane %v843_v9, 1 }
 0x36b   :  { %v845_v11 = vadd.f32 %v844_v10, %v843_v9 }
 0x36d   :  { %v846_v12 = vadd.f32 %v845_v11, %v449_v55 }
 0x36f   :  { %v891_v13 = vmul.f32 -1.442695, %v846_v12 }
 0x371   :  { %996 = vpow2.f32 %v891_v13 }
 0x37e   :  { %v997_v14 = vpop.eup %996 }
 0x37f   :  { %v850_v15 = vadd.f32 1.0, %v997_v14 }
 0x381   :  { %998 = vrcp.f32 %v850_v15 }
 0x38e   :  { %v999_v16 = vpop.eup %998 }
 0x38f   :  { %853 = vst [vmem:[#allocation3 + $0x1] sm:$0x1] %v999_v16 }
 0x390   :  { %1011 = shalt.err (!%p1008_p4)
}
 0x391   :  { %863 = dma.vmem_to_hbm [thread:$0]  %s861_s6, 32, %s1145_s8, [#allocation4]  }
 0x392   :  { %1020 = dma.done.wait [#allocation4], 32  }
 0x393   :  { %1021 = vsyncadd [#allocation4], 4294967264 }
 0x394   :  { %867 = vsyncpa [#allocation4], 1 }

</bundles_post_ra>
